<compile_context>
chip_gen: v7x
topology: tpu7x:2x2x1
jax: 0.10.0
libtpu: 0.0.40
codegen_flags: <defaults>
</compile_context>

<pallas_src>
import math

import jax
import jax.numpy as jnp
from jax import lax
from jax.experimental import pallas as pl
from jax.experimental.pallas import tpu as pltpu


# ----------------------------------------------------------------------------
# Pallas kernel
# ----------------------------------------------------------------------------
def cdae_kernel(uid_ref, item_ref, table_ref, we_ref, wd_ref, bd_ref, out_ref):
    """One batch tile of CDAE.

    uid_ref   : (TB, 1)            int32 user ids (streamed)
    item_ref  : (TB, item_num)     bf16 interaction tile (streamed)
    table_ref : (user_num, factor_num)  resident user-embedding table (+ enc_b folded)
    we_ref    : (item_num, factor_num)  resident encoder weight (f32)
    wd_ref    : (factor_num, item_num)  resident decoder weight (f32)
    bd_ref    : (1, item_num)           resident decoder bias (f32)
    out_ref   : (TB, item_num)          bf16 logits tile
    """
    # encoder: (TB, I) @ (I, F) -> (TB, F), f32 accumulation on the MXU
    h = jnp.dot(item_ref[...].astype(jnp.float32), we_ref[...],
                preferred_element_type=jnp.float32)

    # fused user-embedding gather (enc_b already folded into the table):
    # one-hot matmul gather -> runs on the MXU, which has huge slack here.
    ids = uid_ref[...]                                          # (TB, 1) int32
    tb = ids.shape[0]
    u_num = table_ref.shape[0]
    onehot = (lax.broadcasted_iota(jnp.int32, (tb, u_num), 1) == ids)
    uemb = jnp.dot(onehot.astype(jnp.float32), table_ref[...],
                   preferred_element_type=jnp.float32)          # (TB, F)

    h = jax.nn.sigmoid(h + uemb)                                # f32 EUP (v5e-safe)

    # decoder: (TB, F) @ (F, I) -> (TB, I), lane-dense store
    out = jnp.dot(h, wd_ref[...], preferred_element_type=jnp.float32) + bd_ref[...]
    out_ref[...] = out.astype(out_ref.dtype)


# ----------------------------------------------------------------------------
# Wrapper
# ----------------------------------------------------------------------------
def _round_up(x, m):
    return ((x + m - 1) // m) * m


def _auto_block_b(B, I, Fd, U, block_b, vmem_budget_bytes):
    """Cap the batch tile so double-buffered tiles + resident weights fit VMEM."""
    resident = 2 * 4 * (I * Fd + Fd * I + I + U * Fd)   # f32 weights, 2x for safety
    per_row = 2 * (I * 2 + I * 2 + 4)                   # bf16 item + bf16 out + i32 uid, 2 bufs
    avail = max(vmem_budget_bytes - resident, per_row * 16)
    tb = min(block_b, avail // per_row)
    tb = max(16, (tb // 16) * 16)                       # multiple of 16 (bf16 sublane packing)
    tb = min(tb, _round_up(B, 16))
    return tb


def cdae_forward(params, user, item_vec, *, block_b=1024,
                 out_dtype=jnp.bfloat16,
                 vmem_budget_bytes=24 * 1024 * 1024):
    """CDAE forward (eval mode). Returns logits of shape (batch, item_num)."""
    B, I = item_vec.shape
    U, Fd = params["user_embedding"].shape

    # Narrow the dominant HBM streams: 0/1 interactions are exact in bf16.
    item_bf16 = item_vec.astype(jnp.bfloat16)
    uid = user.astype(jnp.int32).reshape(B, 1)

    # Fold the encoder bias into the user-embedding table (tiny (U, Fd) add).
    table_b = params["user_embedding"] + params["enc_b"]

    TB = _auto_block_b(B, I, Fd, U, block_b, vmem_budget_bytes)
    grid = (pl.cdiv(B, TB),)   # partial last block: padded reads, masked writes

    # Advisory cost estimate for XLA scheduling around the kernel (bf16-aware).
    out_bytes = jnp.dtype(out_dtype).itemsize
    flops = 4 * B * I * Fd + 2 * B * U * Fd             # enc + dec + onehot gather
    transcendentals = B * Fd                            # sigmoid
    bytes_accessed = (B * I * 2 + B * I * out_bytes + B * 4
                      + 4 * (2 * I * Fd + I + U * Fd))

    out = pl.pallas_call(
        cdae_kernel,
        out_shape=jax.ShapeDtypeStruct((B, I), out_dtype),
        grid=grid,
        in_specs=[
            pl.BlockSpec((TB, 1), lambda i: (i, 0)),    # user ids     (streamed)
            pl.BlockSpec((TB, I), lambda i: (i, 0)),    # item_vec     (streamed, bf16)
            pl.BlockSpec((U, Fd), lambda i: (0, 0)),    # emb table+b  (resident)
            pl.BlockSpec((I, Fd), lambda i: (0, 0)),    # encoder W    (resident)
            pl.BlockSpec((Fd, I), lambda i: (0, 0)),    # decoder W    (resident)
            pl.BlockSpec((1, I), lambda i: (0, 0)),     # decoder b    (resident)
        ],
        out_specs=pl.BlockSpec((TB, I), lambda i: (i, 0)),
        compiler_params=pltpu.CompilerParams(
            dimension_semantics=("parallel",),          # megacore on v7x
            vmem_limit_bytes=32 * 1024 * 1024),         # covers v5e's 16 MiB default
        cost_estimate=pl.CostEstimate(
            flops=flops,
            transcendentals=transcendentals,
            bytes_accessed=bytes_accessed),
    )(uid, item_bf16, table_b,
      params["enc_w"], params["dec_w"], params["dec_b"])

    return out


# ----------------------------------------------------------------------------
# Deterministic parameter initialization (mirrors CDAE.__init_weights__)
# ----------------------------------------------------------------------------
def init_cdae_params(key, user_num, item_num, factor_num):
    k_emb, k_ew, k_eb, k_dw, k_db = jax.random.split(key, 5)
    params = {}

    # user_embedding ~ N(0, 0.01)
    params["user_embedding"] = 0.01 * jax.random.normal(
        k_emb, (user_num, factor_num), dtype=jnp.float32)

    # encoder: Linear(item_num, factor_num), xavier_uniform weight,
    # torch-default bias uniform(+-1/sqrt(fan_in)). Stored (in, out).
    limit = math.sqrt(6.0 / (item_num + factor_num))
    params["enc_w"] = jax.random.uniform(
        k_ew, (item_num, factor_num), minval=-limit, maxval=limit,
        dtype=jnp.float32)
    b_bound = 1.0 / math.sqrt(item_num)
    params["enc_b"] = jax.random.uniform(
        k_eb, (1, factor_num), minval=-b_bound, maxval=b_bound,
        dtype=jnp.float32)

    # decoder: Linear(factor_num, item_num), kaiming_uniform(a=1, 'sigmoid')
    # -> gain = 1, bound = sqrt(3 / fan_in); fan_in = factor_num. Stored (in, out).
    bound = math.sqrt(3.0 / factor_num)
    params["dec_w"] = jax.random.uniform(
        k_dw, (factor_num, item_num), minval=-bound, maxval=bound,
        dtype=jnp.float32)
    b_bound = 1.0 / math.sqrt(factor_num)
    params["dec_b"] = jax.random.uniform(
        k_db, (1, item_num), minval=-b_bound, maxval=b_bound,
        dtype=jnp.float32)
    return params


# ----------------------------------------------------------------------------
# Pure-JAX reference (for correctness check)
# ----------------------------------------------------------------------------
def cdae_reference(params, user, item_vec):
    u = params["user_embedding"][user]
    h = item_vec @ params["enc_w"] + params["enc_b"] + u
    h = jax.nn.sigmoid(h)
    return h @ params["dec_w"] + params["dec_b"]


# ----------------------------------------------------------------------------
# Main
# ----------------------------------------------------------------------------
if __name__ == "__main__":
    user_num = 64
    item_num = 256          # multiple of 128 -> lane-dense output stores
    factor_num = 32
    corruption_ratio = 0.25  # dropout -> identity at inference (eval mode)
    batch = 32

    key = jax.random.PRNGKey(0)
    pkey, ukey, vkey = jax.random.split(key, 3)
    params = init_cdae_params(pkey, user_num, item_num, factor_num)

    user = jax.random.randint(ukey, (batch,), 0, user_num, dtype=jnp.int32)
    # binary interaction vector, like an implicit-feedback row
    item_vec = (jax.random.uniform(vkey, (batch, item_num)) < 0.1).astype(
        jnp.float32)

    # block_b=16 -> grid=(2,): exercises a multi-step (and megacore-even) grid.
    # Production would keep the default block_b=1024 (>= 512 per the roofline knee).
    out = cdae_forward(params, user, item_vec, block_b=16)
    out = jax.block_until_ready(out)

    ref = cdae_reference(params, user, item_vec)
    assert out.shape == (batch, item_num), out.shape
    assert out.dtype == jnp.bfloat16, out.dtype
    # bf16 output -> relaxed tolerance vs the f32 reference.
    err = jnp.max(jnp.abs(out.astype(jnp.float32) - ref))
    assert jnp.allclose(out.astype(jnp.float32), ref, atol=2e-2, rtol=2e-2), err

    print("KERNEL_OK")
</pallas_src>

<mosaic_0001>
module attributes {stable_mosaic.version = 11 : i64} {
  func.func @cdae_kernel(%arg0: i32, %arg1: memref<16x1xi32, #tpu.memory_space<vmem>>, %arg2: memref<16x256xbf16, #tpu.memory_space<vmem>>, %arg3: memref<64x32xf32, #tpu.memory_space<vmem>>, %arg4: memref<256x32xf32, #tpu.memory_space<vmem>>, %arg5: memref<32x256xf32, #tpu.memory_space<vmem>>, %arg6: memref<1x256xf32, #tpu.memory_space<vmem>>, %arg7: memref<16x256xbf16, #tpu.memory_space<vmem>>) attributes {dimension_semantics = [#tpu.dimension_semantics<parallel>], iteration_bounds = array<i64: 2>, scalar_prefetch = 0 : i64, scratch_operands = 0 : i64, tpu.core_type = #tpu.core_type<tc>, window_params = [{transform_indices = @transform_0, window_bounds = array<i64: 16, 1>}, {transform_indices = @transform_1, window_bounds = array<i64: 16, 256>}, {pipeline_mode = #tpu.pipeline_mode<synchronous>, transform_indices = @transform_2, window_bounds = array<i64: 64, 32>}, {pipeline_mode = #tpu.pipeline_mode<synchronous>, transform_indices = @transform_3, window_bounds = array<i64: 256, 32>}, {pipeline_mode = #tpu.pipeline_mode<synchronous>, transform_indices = @transform_4, window_bounds = array<i64: 32, 256>}, {pipeline_mode = #tpu.pipeline_mode<synchronous>, transform_indices = @transform_5, window_bounds = array<i64: 1, 256>}, {transform_indices = @transform_6, window_bounds = array<i64: 16, 256>}]} {
    %c0 = arith.constant 0 : index
    %c0_0 = arith.constant 0 : index
    %0 = vector.load %arg2[%c0, %c0_0] : memref<16x256xbf16, #tpu.memory_space<vmem>>, vector<16x256xbf16>
    %1 = arith.extf %0 : vector<16x256xbf16> to vector<16x256xf32>
    %c0_1 = arith.constant 0 : index
    %c0_2 = arith.constant 0 : index
    %2 = vector.load %arg4[%c0_1, %c0_2] : memref<256x32xf32, #tpu.memory_space<vmem>>, vector<256x32xf32>
    %cst = arith.constant dense<0.000000e+00> : vector<16x32xf32>
    %3 = tpu.matmul %1, %2, %cst {dimension_numbers = #tpu.dot_dimension_numbers<[1], [0], [0], [1], [0, 0, 1, 1], [], []>} : vector<16x256xf32>, vector<256x32xf32>, vector<16x32xf32> -> vector<16x32xf32>
    %c0_3 = arith.constant 0 : index
    %c0_4 = arith.constant 0 : index
    %4 = vector.load %arg1[%c0_3, %c0_4] : memref<16x1xi32, #tpu.memory_space<vmem>>, vector<16x1xi32>
    %5 = tpu.iota {dimensions = array<i32: 1>} : vector<16x64xi32>
    %6 = vector.broadcast %4 : vector<16x1xi32> to vector<16x64xi32>
    %7 = arith.cmpi eq, %5, %6 : vector<16x64xi32>
    %8 = arith.extui %7 : vector<16x64xi1> to vector<16x64xi32>
    %9 = arith.sitofp %8 : vector<16x64xi32> to vector<16x64xf32>
    %c0_5 = arith.constant 0 : index
    %c0_6 = arith.constant 0 : index
    %10 = vector.load %arg3[%c0_5, %c0_6] : memref<64x32xf32, #tpu.memory_space<vmem>>, vector<64x32xf32>
    %cst_7 = arith.constant dense<0.000000e+00> : vector<16x32xf32>
    %11 = tpu.matmul %9, %10, %cst_7 {dimension_numbers = #tpu.dot_dimension_numbers<[1], [0], [0], [1], [0, 0, 1, 1], [], []>} : vector<16x64xf32>, vector<64x32xf32>, vector<16x32xf32> -> vector<16x32xf32>
    %12 = arith.addf %3, %11 : vector<16x32xf32>
    %13 = arith.negf %12 : vector<16x32xf32>
    %14 = math.exp %13 : vector<16x32xf32>
    %cst_8 = arith.constant 1.000000e+00 : f32
    %15 = vector.broadcast %cst_8 : f32 to vector<16x32xf32>
    %16 = arith.addf %15, %14 : vector<16x32xf32>
    %17 = arith.divf %15, %16 : vector<16x32xf32>
    %c0_9 = arith.constant 0 : index
    %c0_10 = arith.constant 0 : index
    %18 = vector.load %arg5[%c0_9, %c0_10] : memref<32x256xf32, #tpu.memory_space<vmem>>, vector<32x256xf32>
    %cst_11 = arith.constant dense<0.000000e+00> : vector<16x256xf32>
    %19 = tpu.matmul %17, %18, %cst_11 {dimension_numbers = #tpu.dot_dimension_numbers<[1], [0], [0], [1], [0, 0, 1, 1], [], []>} : vector<16x32xf32>, vector<32x256xf32>, vector<16x256xf32> -> vector<16x256xf32>
    %c0_12 = arith.constant 0 : index
    %c0_13 = arith.constant 0 : index
    %20 = vector.load %arg6[%c0_12, %c0_13] : memref<1x256xf32, #tpu.memory_space<vmem>>, vector<1x256xf32>
    %21 = vector.broadcast %20 : vector<1x256xf32> to vector<16x256xf32>
    %22 = arith.addf %19, %21 : vector<16x256xf32>
    %23 = arith.truncf %22 : vector<16x256xf32> to vector<16x256xbf16>
    %c0_14 = arith.constant 0 : index
    %c0_15 = arith.constant 0 : index
    %24 = vector.load %arg7[%c0_14, %c0_15] : memref<16x256xbf16, #tpu.memory_space<vmem>>, vector<16x256xbf16>
    tpu.vector_store %arg7[%c0_14, %c0_15], %23 {strides = array<i32>} : memref<16x256xbf16, #tpu.memory_space<vmem>>, vector<16x256xbf16>,
    return
  }
  func.func @transform_0(%arg0: i32) -> (i32, i32) {
    %c0_i32 = arith.constant 0 : i32
    %c0_i32_0 = arith.constant 0 : i32
    return %arg0, %c0_i32 : i32, i32
  }
  func.func @transform_1(%arg0: i32) -> (i32, i32) {
    %c0_i32 = arith.constant 0 : i32
    %c0_i32_0 = arith.constant 0 : i32
    return %arg0, %c0_i32 : i32, i32
  }
  func.func @transform_2(%arg0: i32) -> (i32, i32) {
    %c0_i32 = arith.constant 0 : i32
    %c0_i32_0 = arith.constant 0 : i32
    %c0_i32_1 = arith.constant 0 : i32
    return %c0_i32, %c0_i32_0 : i32, i32
  }
  func.func @transform_3(%arg0: i32) -> (i32, i32) {
    %c0_i32 = arith.constant 0 : i32
    %c0_i32_0 = arith.constant 0 : i32
    %c0_i32_1 = arith.constant 0 : i32
    return %c0_i32, %c0_i32_0 : i32, i32
  }
  func.func @transform_4(%arg0: i32) -> (i32, i32) {
    %c0_i32 = arith.constant 0 : i32
    %c0_i32_0 = arith.constant 0 : i32
    %c0_i32_1 = arith.constant 0 : i32
    return %c0_i32, %c0_i32_0 : i32, i32
  }
  func.func @transform_5(%arg0: i32) -> (i32, i32) {
    %c0_i32 = arith.constant 0 : i32
    %c0_i32_0 = arith.constant 0 : i32
    %c0_i32_1 = arith.constant 0 : i32
    return %c0_i32, %c0_i32_0 : i32, i32
  }
  func.func @transform_6(%arg0: i32) -> (i32, i32) {
    %c0_i32 = arith.constant 0 : i32
    %c0_i32_0 = arith.constant 0 : i32
    return %arg0, %c0_i32 : i32, i32
  }
}

</mosaic_0001>

<bundles_post_ra>
// kernel: tpu_custom_call.1
= control target key start
LH: loop header
LB: loop body
LE: loop exit
PB: predicated region body
PF: predicated region fallthrough
CT: control target
= control target key end

     0   :  { %11 = vsyncpa [#allocation3], 0  ;;  %s1285_s0 = inlined_call_operand.vmem [shape: s32[32,1], index: 0, kind: input, shape index: {}]   ;;  %s1286_s1 = inlined_call_operand.vmem [shape: bf16[32,256], index: 1, kind: input, shape index: {}]   ;;  %s1287_s2 = inlined_call_operand.vmem [shape: f32[64,32], index: 2, kind: input, shape index: {}]   ;;  %s1288_s3 = inlined_call_operand.vmem [shape: f32[256,32], index: 3, kind: input, shape index: {}]   ;;  %s1289_s4 = inlined_call_operand.vmem [shape: f32[32,256], index: 4, kind: input, shape index: {}]   ;;  %s1290_s5 = inlined_call_operand.vmem [shape: f32[1,256], index: 5, kind: input, shape index: {}]   ;;  %s1291_s6 = inlined_call_operand.hbm [shape: bf16[32,256], index: 6, kind: output, shape index: {}]  }
   0x1   :  { %13 = vsyncpa [#allocation3 + $0x1], 0  ;;  %s1026_s21 = smov 0   ;;  %s1028_s22 = smov 0  }
   0x2   :  { %s1030_s23 = smov 0   ;;  %s1032_s24 = smov 0  }
   0x3 LB: > { %s1047_s25 = sadd.s32 4294967295, %s984_s24   ;;  %s716_s26 = sadd.s32 4294967294, %s984_s24   ;;  %s984_s24 = sphi %s1032_s24, %s1297_s24   ;;  %s980_s23 = sphi %s1030_s23, %s1296_s23   ;;  %s976_s22 = sphi %s1028_s22, %s1295_s22   ;;  %s972_s21 = sphi %s1026_s21, %s1294_s21  }
   0x4   : > { %s1051_s27 = sadd.s32 1, %s984_s24   ;;  %s162_s28 = sadd.s32 1, %s980_s23 }
   0x5   : > { %s159_s29 = ssub.s32 %s984_s24, %s1051_s27  ;;  %p172_p0 = scmp.ne.s32.totalorder %s980_s23, %s976_s22 }
   0x6   : > { %p160_p1 = scmp.eq.s32.totalorder %s159_s29, 0  ;;  %p173_p2 = scmp.eq.s32.totalorder %s1047_s25, 1 }
   0x7   : > { %p178_p3 = scmp.ne.s32.totalorder %s976_s22, %s972_s21  ;;  %p179_p4 = scmp.eq.s32.totalorder %s716_s26, 1 }
   0x8   : > { %s1062_s30 = scalar_select %p160_p1, %s980_s23, %s162_s28  }
   0x9   : > { %p1064_p5 = por %p173_p2, %p172_p0  ;;  %p1068_p6 = por %p179_p4, %p178_p3 }
   0xa   : > { %p719_p7 = scmp.ge.s32.totalorder %s984_s24, 1  ;;  %p228_p8 = scmp.lt.s32.totalorder %s984_s24, 3 }
   0xc   : > { %p229_p9 = pnand %p719_p7, %p228_p8 }
   0xd   : > { %s721_s9 = sshll.u32 (!%p229_p9), %s1047_s25, 1  ;;  %v300_v0 = vld [vmem:[%s1288_s3 + $0x80] sm:$0xff] (!%p229_p9)  ;;  %v301_v1 = vld [vmem:[%s1288_s3 + $0x88] sm:$0xff] (!%p229_p9)  ;;  %v986_v3 = vmov (!%p229_p9), 0   ;;  %v302_v6 = vld [vmem:[%s1288_s3 + $0x90] sm:$0xff] (!%p229_p9)  ;;  %vm340_vm0 = vcmask (!%p229_p9), 523264  }
   0xe   : > { %232 = sbr.rel (%p229_p9) target bundleno = 636 (0x27c), region = 44  ;;  %v284_v2 = vld [vmem:[%s1288_s3] sm:$0xff] (!%p229_p9)  ;;  %913 = vset.pattern.permute.xlu0 (!%p229_p9), %v986_v3  ;;  %p265_p10 = scmp.lt.s32.totalorder (!%p229_p9), %s721_s9, 3  ;;  %v830_v4 = vpack.c.bf16 (!%p229_p9), %v301_v1, %v300_v0  ;;  %v285_v5 = vld [vmem:[%s1288_s3 + $0x8] sm:$0xff] (!%p229_p9)  ;;  %v303_v7 = vld [vmem:[%s1288_s3 + $0x98] sm:$0xff] (!%p229_p9)  ;;  %vm529_vm3 = vcmask (!%p229_p9), 261120  }
   0xf   : > { %v832_v8 = vpack.c.bf16 (!%p229_p9), %v285_v5, %v284_v2  ;;  %v834_v9 = vpack.c.bf16 (!%p229_p9), %v303_v7, %v302_v6  ;;  %v286_v10 = vld [vmem:[%s1288_s3 + $0x10] sm:$0xff] (!%p229_p9)  ;;  %v287_v11 = vld [vmem:[%s1288_s3 + $0x18] sm:$0xff] (!%p229_p9)  ;;  %v304_v12 = vld [vmem:[%s1288_s3 + $0xa0] sm:$0xff] (!%p229_p9)  ;;  %v318_v5 = vlaneseq (!%p229_p9)  ;;  %s261_s13 = sand.u32 (!%p229_p9), 1, %s976_s22   ;;  %s746_s19 = sshll.u32 (!%p229_p9), %s1047_s25, 8 }
  0x10   : > { %831 = vmatprep.subr.bf16.mxu1 (!%p229_p9), %v830_v4  ;;  %v305_v13 = vld [vmem:[%s1288_s3 + $0xa8] sm:$0xff] (!%p229_p9)  ;;  %v836_v14 = vpack.c.bf16 (!%p229_p9), %v287_v11, %v286_v10  ;;  %v288_v16 = vld [vmem:[%s1288_s3 + $0x20] sm:$0xff] (!%p229_p9)  ;;  %v306_v18 = vld [vmem:[%s1288_s3 + $0xb0] sm:$0xff] (!%p229_p9)  ;;  %s720_s14 = sshll.u32 (!%p229_p9), %s261_s13, 4  ;;  %s1242_s28 = scalar_lea.hbm (!%p229_p9), %s1291_s6, %s746_s19 }
  0x11   : > { %833 = vmatpush3.bf16.msra.mxu1 (!%p229_p9), %v832_v8  ;;  %v838_v15 = vpack.c.bf16 (!%p229_p9), %v305_v13, %v304_v12  ;;  %v289_v17 = vld [vmem:[%s1288_s3 + $0x28] sm:$0xff] (!%p229_p9)  ;;  %v307_v19 = vld [vmem:[%s1288_s3 + $0xb8] sm:$0xff] (!%p229_p9)  ;;  %v290_v22 = vld [vmem:[%s1288_s3 + $0x30] sm:$0xff] (!%p229_p9)  ;;  %v319_v6 = vand.u32 (!%p229_p9), 127, %v318_v5  ;;  %v987_v8 = vmov (!%p229_p9), 0.0   ;;  %s263_s17 = scalar_lea.vmem (!%p229_p9), [#allocation2], %s720_s14 }
  0x12   : > { %835 = vmatprep.subr.bf16.mxu1 (!%p229_p9), %v834_v9  ;;  %v840_v21 = vpack.c.bf16 (!%p229_p9), %v289_v17, %v288_v16  ;;  %v332_v23 = vld [vmem:[%s1287_s2] sm:$0xff] (!%p229_p9)  ;;  %v842_v25 = vpack.c.bf16 (!%p229_p9), %v307_v19, %v306_v18  ;;  %v291_v26 = vld [vmem:[%s1288_s3 + $0x38] sm:$0xff] (!%p229_p9)  ;;  %v333_v27 = vld [vmem:[%s1287_s2 + $0x8] sm:$0xff] (!%p229_p9)  ;;  %s642_s18 = sshll.u32 (!%p229_p9), %s263_s17, 4  ;;  %s988_s25 = smov (!%p229_p9), [#allocation2]   ;;  %s1237_s18 = int_to_ptr.vmem [resolvable:$true] %s642_s18 }
  0x13   : > { %v308_v28 = vld [vmem:[%s1288_s3 + $0xc0] sm:$0xff] (!%p229_p9)  ;;  %v309_v29 = vld [vmem:[%s1288_s3 + $0xc8] sm:$0xff] (!%p229_p9)  ;;  %v814_v30 = vpack.c.bf16 (!%p229_p9), %v333_v27, %v332_v23  ;;  %v334_v31 = vld [vmem:[%s1287_s2 + $0x10] sm:$0xff] (!%p229_p9)  ;;  %v844_v33 = vpack.c.bf16 (!%p229_p9), %v291_v26, %v290_v22  ;;  %s922_s10 = scalar_lea.vmem (!%p229_p9), %s1237_s18, 256  ;;  %s926_s11 = sshll.u32 (!%p229_p9), %s988_s25, 4  ;;  %s927_s11 = int_to_ptr.vmem [resolvable:$false] %s926_s11 }
  0x14   : > { %v335_v32 = vld [vmem:[%s1287_s2 + $0x18] sm:$0xff] (!%p229_p9)  ;;  %v292_v34 = vld [vmem:[%s1288_s3 + $0x40] sm:$0xff] (!%p229_p9)  ;;  %v846_v37 = vpack.c.bf16 (!%p229_p9), %v309_v29, %v308_v28  ;;  %v293_v38 = vld [vmem:[%s1288_s3 + $0x48] sm:$0xff] (!%p229_p9)  ;;  %p923_p11 = scmp.ne.s32.totalorder (!%p229_p9), %s1237_s18, %s922_s10  ;;  %s928_s12 = scalar_lea.vmem (!%p229_p9), %s927_s11, 512 }
  0x15   : > { %s1299_s9 = smov (!%p265_p10, %s721_s9), 3  ;;  %837 = vmatpush3.bf16.msra.mxu1 %v836_v14  ;;  %v818_v35 = vpack.c.bf16 %v335_v32, %v334_v31  ;;  %v336_v36 = vld [vmem:[%s1287_s2 + $0x20] sm:$0xff]  ;;  %815 = vmatprep.subr.bf16.mxu0 %v814_v30  ;;  %v337_v39 = vld [vmem:[%s1287_s2 + $0x28] sm:$0xff]  ;;  %v310_v41 = vld [vmem:[%s1288_s3 + $0xd0] sm:$0xff]  ;;  %v848_v45 = vpack.c.bf16 %v293_v38, %v292_v34  ;;  %p929_p0 = scmp.lt.s32.totalorder %s1237_s18, %s927_s11 }
  0x16   : > { %s722_s16 = sshll.u32 %s1299_s9, 3  ;;  %839 = vmatprep.subr.bf16.mxu1 %v838_v15  ;;  %v311_v42 = vld [vmem:[%s1288_s3 + $0xd8] sm:$0xff]  ;;  %817 = vmatpush3.bf16.msra.mxu0 %v814_v30  ;;  %v822_v44 = vpack.c.bf16 %v337_v39, %v336_v36  ;;  %v338_v46 = vld [vmem:[%s1287_s2 + $0x30] sm:$0xff]  ;;  %v312_v51 = vld [vmem:[%s1288_s3 + $0xe0] sm:$0xff]  ;;  %p924_p12 = pnand %p923_p11, %p1064_p5 }
  0x17   : > { %s268_s29 = scalar_lea.vmem %s1285_s0, %s722_s16  ;;  %s1147_s15 = scalar_lea.vmem %s1286_s1, %s722_s16  ;;  %819 = vmatprep.subr.bf16.mxu0 %v818_v35  ;;  %v339_v47 = vld [vmem:[%s1287_s2 + $0x38] sm:$0xff]  ;;  %v850_v48 = vpack.c.bf16 %v311_v42, %v310_v41  ;;  %v294_v49 = vld [vmem:[%s1288_s3 + $0x50] sm:$0xff]  ;;  %v313_v52 = vld [vmem:[%s1288_s3 + $0xe8] sm:$0xff]  ;;  %v520_v42 = vshrl.u32 %v318_v5, 7 }
  0x18   : > { %v316_v20 = vld [vmem:[%s268_s29] sm:$0xff]  ;;  %v317_v24 = vld [vmem:[%s268_s29 + $0x8] sm:$0xff]  ;;  %v295_v50 = vld [vmem:[%s1288_s3 + $0x58] sm:$0xff]  ;;  %v826_v53 = vpack.c.bf16 %v339_v47, %v338_v46  ;;  %v854_v55 = vpack.c.bf16 %v313_v52, %v312_v51  ;;  %s1244_s16 = scalar_lea.sflag [#allocation3], %s261_s13  ;;  %p925_p13 = pneg %p924_p12 }
  0x19   : > { %321 = vperm.xlu0 %913, %v316_v20   ;;  %841 = vmatpush3.bf16.msra.mxu1 %v840_v21  ;;  %v278_v40 = vld [vmem:[%s1147_s15] sm:$0xff]  ;;  %v852_v54 = vpack.c.bf16 %v295_v50, %v294_v49  ;;  %v297_v57 = vld [vmem:[%s1288_s3 + $0x68] sm:$0xff]  ;;  %v314_v58 = vld [vmem:[%s1288_s3 + $0xf0] sm:$0xff]  ;;  %p930_p1 = scmp.lt.s32.totalorder %s928_s12, %s922_s10 }
  0x1a   : > { %843 = vmatprep.subr.bf16.mxu1 %v842_v25  ;;  %v281_v43 = vunpack.c.h.bf16 %v278_v40  ;;  %821 = vmatpush3.bf16.msra.mxu0 %v818_v35  ;;  %v296_v56 = vld [vmem:[%s1288_s3 + $0x60] sm:$0xff]  ;;  %v315_v59 = vld [vmem:[%s1288_s3 + $0xf8] sm:$0xff]  ;;  %v298_v62 = vld [vmem:[%s1288_s3 + $0x70] sm:$0xff]  ;;  %v280_v2 = vunpack.c.l.bf16 %v278_v40 }
  0x1b   : > { %823 = vmatprep.subr.bf16.mxu0 %v822_v44  ;;  %v856_v60 = vpack.c.bf16 %v297_v57, %v296_v56  ;;  %v858_v61 = vpack.c.bf16 %v315_v59, %v314_v58  ;;  %v299_v63 = vld [vmem:[%s1288_s3 + $0x78] sm:$0xff]  ;;  %v279_v1 = vld [vmem:[%s1147_s15 + $0x8] sm:$0xff]  ;;  %v509_v14 = vld [vmem:[%s1289_s4] sm:$0xff]  ;;  %p931_p2 = por %p930_p1, %p929_p0 }
  0x1c   : > { %486 = vmatprep.mubr.f32.mxu1 %v281_v43  ;;  %v860_v0 = vpack.c.bf16 %v299_v63, %v298_v62  ;;  %v283_v3 = vunpack.c.h.bf16 %v279_v1  ;;  %v282_v4 = vunpack.c.l.bf16 %v279_v1  ;;  %v510_v12 = vld [vmem:[%s1289_s4 + $0x8] sm:$0xff]  ;;  %v512_v13 = vld [vmem:[%s1289_s4 + $0x18] sm:$0xff]  ;;  %v511_v16 = vld [vmem:[%s1289_s4 + $0x10] sm:$0xff]  ;;  %v521_v43 = vsub.s32 0, %v520_v42 }
  0x1d   : > { %324 = vperm.xlu0 %913, %v317_v24   ;;  %845 = vmatpush3.bf16.msra.mxu1 %v844_v33  ;;  %v862_v15 = vpack.c.bf16 %v512_v13, %v510_v12  ;;  %v514_v17 = vld [vmem:[%s1289_s4 + $0x28] sm:$0xff]  ;;  %v516_v18 = vld [vmem:[%s1289_s4 + $0x38] sm:$0xff]  ;;  %v864_v20 = vpack.c.bf16 %v511_v16, %v509_v14  ;;  %v513_v22 = vld [vmem:[%s1289_s4 + $0x20] sm:$0xff]  ;;  %p932_p3 = pnand %p931_p2, %p925_p13 }
  0x1e   : > { %847 = vmatprep.subr.bf16.mxu1 %v846_v37  ;;  %825 = vmatpush3.bf16.msra.mxu0 %v822_v44  ;;  %v866_v21 = vpack.c.bf16 %v516_v18, %v514_v17  ;;  %v515_v23 = vld [vmem:[%s1289_s4 + $0x30] sm:$0xff]  ;;  %v517_v44 = vld [vmem:[%s1290_s5] sm:$0x3] }
  0x1f   : > { %827 = vmatprep.subr.bf16.mxu0 %v826_v53  ;;  %v868_v26 = vpack.c.bf16 %v515_v23, %v513_v22  ;;  %v522_v46 = vrot.slane %v517_v44, %v521_v43 }
  0x21   : > { %849 = vmatpush3.bf16.msra.mxu1 %v848_v45  ;;  %v525_v45 = vsub.s32 1, %v520_v42 }
  0x22   : > { %851 = vmatprep.subr.bf16.mxu1 %v850_v48  ;;  %829 = vmatpush3.bf16.msra.mxu0 %v826_v53 }
  0x23   : > { %863 = vmatprep.subr.bf16.mxu0 %v862_v15  ;;  %v526_v47 = vrot.slane %v517_v44, %v525_v45 }
  0x25   : > { %853 = vmatpush3.bf16.msra.mxu1 %v852_v54 }
  0x26   : > { %855 = vmatprep.subr.bf16.mxu1 %v854_v55 }
  0x29   : > { %857 = vmatpush3.bf16.msra.mxu1 %v856_v60 }
  0x2a   : > { %859 = vmatprep.subr.bf16.mxu1 %v858_v61 }
  0x2d   : > { %861 = vmatpush3.bf16.msra.mxu1 %v860_v0 }
  0x30   : > { %487 = vmatmul.mubr.f32.vlgmr.msra.gmra.mrb[0].mxu1 %v280_v2 }
  0x31   : > { %491 = vmatprep.mubr.f32.mxu1 %v283_v3 }
  0x34   : > { %492 = vmatmul.mubr.f32.gmra.mrb[2].mxu1 %v282_v4 }
  0x98   : > { %v322_v7 = vpop.permute.xlu0 %321 }
  0x99   : > { %vm326_vm1 = vcmp.eq.s32.totalorder %v319_v6, %v322_v7 }
  0x9a   : > { %v726_v9 = vsel %vm326_vm1, 1.0, %v987_v8 }
  0x9b   : > { %811 = vmatprep.mubr.msk.f32.mxu0 %vm340_vm0, %v726_v9 }
  0x9c   : > { %v325_v10 = vpop.permute.xlu0 %324 }
  0x9d   : > { %vm327_vm2 = vcmp.eq.s32.totalorder %v319_v6, %v325_v10 }
  0x9e   : > { %v727_v11 = vsel %vm327_vm2, 1.0, %v987_v8 }
  0x9f   : > { %812 = vmatmul.mubr.msk.f32.vlgmr.msra.gmra.mrb[0].mxu0 %vm340_vm0, %v727_v11 }
  0xa0   : > { %600 = vmatprep.mubr.f32.mxu0 %v987_v8  ;;  %865 = vmatpush1.bf16.msra.mxu0 %v864_v20 }
  0xa1   : > { %867 = vmatprep.subr.bf16.mxu0 %v866_v21 }
  0xa4   : > { %869 = vmatpush1.bf16.msra.mxu0 %v868_v26 }
 0x103   : > { %v789_v19 = vpop.f32.mrb[0].mxu1 }
 0x104   : > { %v790_v24 = vpop.f32.mrb[1].mxu1 }
 0x105   : > { %v791_v25 = vadd.f32 %v790_v24, %v789_v19 }
 0x107   : > { %v792_v27 = vpop.f32.mrb[2].mxu1 }
 0x108   : > { %v793_v28 = vpop.f32.mrb[3].mxu1 }
 0x109   : > { %v794_v29 = vadd.f32 %v793_v28, %v792_v27 }
 0x172   : > { %v813_v30 = vpop.f32.mrb[0].mxu0 }
 0x173   : > { %v494_v31 = vadd.f32 %v813_v30, %v794_v29  ;;  %v413_v32 = vpop.f32.mrb[1].mxu0 }
 0x174   : > { %v489_v33 = vadd.f32 %v791_v25, %v413_v32 }
 0x175   : > { %v731_v34 = vmul.f32 -1.442695, %v494_v31 }
 0x176   : > { %v730_v35 = vmul.f32 -1.442695, %v489_v33 }
 0x177   : > { %914 = vpow2.f32 %v731_v34 }
 0x178   : > { %916 = vpow2.f32 %v730_v35 }
 0x181   : > { %v915_v36 = vpop.eup %914 }
 0x182   : > { %v917_v37 = vpop.eup %916  ;;  %v504_v39 = vadd.f32 1.0, %v915_v36 }
 0x183   : > { %v503_v38 = vadd.f32 1.0, %v917_v37 }
 0x185   : > { %918 = vrcp.f32 %v503_v38 }
 0x186   : > { %920 = vrcp.f32 %v504_v39 }
 0x18f   : > { %v919_v40 = vpop.eup %918 }
 0x190   : > { %732 = vmatmul.mubr.msk.f32.vlgmr.msra.gmra.mrb[2].mxu0 %vm529_vm3, %v919_v40  ;;  %v921_v41 = vpop.eup %920 }
 0x191   : > { %606 = vmatprep.mubr.f32.mxu0 %v987_v8 }
 0x194   : > { %733 = vmatmul.mubr.msk.f32.gmra.mrb[4].mxu0 %vm529_vm3, %v921_v41 }
 0x263   : > { %v602_v48 = vpop.f32.mrb[2].mxu0 }
 0x264   : > { %v603_v49 = vadd.f32 %v602_v48, %v522_v46  ;;  %v604_v50 = vpop.f32.mrb[3].mxu0 }
 0x265   : > { %v605_v51 = vadd.f32 %v604_v50, %v526_v47 }
 0x267   : > { %v743_v52 = vpack.c.bf16 %v605_v51, %v603_v49  ;;  %v608_v53 = vpop.f32.mrb[4].mxu0 }
 0x268   : > { %v609_v54 = vadd.f32 %v608_v53, %v522_v46  ;;  %v610_v55 = vpop.f32.mrb[5].mxu0 }
 0x269   : > { %625 = vst [vmem:[%s263_s17] sm:$0xff] %v743_v52  ;;  %v611_v56 = vadd.f32 %v610_v55, %v526_v47 }
 0x26b   : > { %v744_v57 = vpack.c.bf16 %v611_v56, %v609_v54 }
 0x26d   : > { %626 = vst [vmem:[%s263_s17 + $0x8] sm:$0xff] %v744_v57 }
 0x26e   : > { %935 = shalt.err (!%p932_p3)
}
 0x26f   : > { %s936_s15 = scalar_lea.hbm %s1242_s28, 256  ;;  %s940_s13 = scalar_lea.hbm %s1291_s6, 512 }
 0x270   : > { %p937_p4 = scmp.ne.s32.totalorder %s1242_s28, %s936_s15  ;;  %p941_p9 = scmp.lt.u32.totalorder %s1242_s28, %s1291_s6 }
 0x271   : > { %p942_p10 = scmp.lt.u32.totalorder %s940_s13, %s936_s15  ;;  %p944_p12 = scmp.lt.u32.totalorder %s936_s15, %s1242_s28 }
 0x272   : > { %p938_p7 = pnand %p937_p4, %p1064_p5 }
 0x273   : > { %p943_p11 = por %p942_p10, %p941_p9 }
 0x274   : > { %p939_p8 = pneg %p938_p7 }
 0x275   : > { %p945_p13 = por %p944_p12, %p943_p11 }
 0x277   : > { %p946_p0 = pnand %p945_p13, %p939_p8 }
 0x279   : > { %949 = shalt.err (!%p946_p0)
}
 0x27a   : > { %s989_s19 = smov 128   ;;  %s990_s20 = smov 8  }
 0x27b   : > { %870 = dma.vmem_to_hbm [thread:$0]  (%p1064_p5), %s1237_s18, 256, %s1242_s28, %s1244_s16, %s989_s19, %s989_s19, %s990_s20  }
 0x27c PF: > { %p876_p1 = scmp.ge.s32.totalorder %s984_s24, 2  ;;  %s657_s26 = sand.u32 1, %s972_s21  }
 0x27d   : > { %s658_s10 = scalar_lea.sflag [#allocation3], %s657_s26 }
 0x27e   : > { %p873_p2 = pnand %p876_p1, %p1068_p6 }
 0x280   : > { %967 = dma.done.wait (!%p873_p2), %s658_s10, 256  }
 0x281   : > { %969 = vsyncadd (!%p873_p2), %s658_s10, 4294967040  ;;  %p16_p3 = scmp.ge.s32.totalorder %s1051_s27, 4   ;;  %s1294_s21 = smov %s976_s22 }
 0x282   : > { %s1295_s22 = smov %s980_s23  ;;  %s1296_s23 = smov %s1062_s30 }
 0x283   : > { %s1297_s24 = smov %s1051_s27  ;;  %18 = sbr.rel (!%p16_p3) target bundleno = 3 (0x3), region = 82 }
 0x28a   :  { %663 = vsyncpa [#allocation3], 1 }
 0x28b   :  { %665 = vsyncpa [#allocation3 + $0x1], 1 }

</bundles_post_ra>
